<compile_context>
chip_gen: v7x
topology: tpu7x:2x2x1
jax: 0.10.0
libtpu: 0.0.40
codegen_flags: <defaults>
</compile_context>

<pallas_src>
import functools

import jax
import jax.numpy as jnp
from jax.experimental import pallas as pl
from jax.experimental.pallas import tpu as pltpu


def _dice_kernel(x_ref, t_ref, inter_ref, denom_ref, *, acc_rows):
    """One grid step: a (C, bm, 128) slab of one batch element.

    x_ref, t_ref        : (C, bm, 128) VMEM tiles (logits / target)
    inter_ref, denom_ref: (C, acc_rows, 128) f32 output blocks, resident across
                          the M-block grid axis; hold per-lane partial sums.
    """
    j = pl.program_id(1)

    @pl.when(j == 0)
    def _():
        inter_ref[...] = jnp.zeros_like(inter_ref)
        denom_ref[...] = jnp.zeros_like(denom_ref)

    x = x_ref[...].astype(jnp.float32)   # (C, bm, 128)
    t = t_ref[...].astype(jnp.float32)

    # Softmax over channels: axis 0 is a leading dim -> C-1 VPU max/add ops.
    m = jnp.max(x, axis=0, keepdims=True)
    e = jnp.exp(x - m)
    p = e * pl.reciprocal(jnp.sum(e, axis=0, keepdims=True), approx=True)

    c, bm, _ = x.shape
    nb = bm // acc_rows
    # Fold bm sublane-rows into acc_rows rows with VPU adds (non-minor axis).
    pt = jnp.sum((p * t).reshape(c, nb, acc_rows, 128), axis=1)
    pd = jnp.sum((p + t).reshape(c, nb, acc_rows, 128), axis=1)

    inter_ref[...] += pt
    denom_ref[...] += pd


def _pick_block_rows(mq, c, itemsize=4, vmem_budget=8 * 1024 * 1024):
    """# of 128-lane rows per grid step, sized against a VMEM pipeline budget.

    Per-step footprint ~= 2 inputs x 2 pipeline buffers x (C * bm * 128 * itemsize).
    """
    cap = max(1, vmem_budget // (2 * 2 * c * 128 * itemsize))
    if mq <= cap:
        return mq                         # whole M extent in one step
    bm = (min(cap, 2048) // 8) * 8        # keep the sublane dim 8-aligned
    while bm >= 8 and mq % bm:
        bm -= 8
    if bm >= 8:
        return bm
    # TODO(synk): pad M to a multiple of 8*128 and mask instead of this fallback.
    return mq


@jax.jit
def dice_loss(output, target):
    """output: (N, C, H, W) logits; target: (N, 1, C, H, W)."""
    target = jnp.squeeze(target, axis=1)
    assert output.shape == target.shape, "'input' and 'target' must have the same shape"

    N, C, H, W = output.shape
    M = H * W
    assert M % 128 == 0, "demo assumes H*W divisible by 128"
    # TODO(synk): pad + mask the spatial tail for H*W not divisible by 128.
    Mq = M // 128

    # Free reshapes -- no transpose, no extra HBM round trip.
    x4 = output.reshape(N, C, Mq, 128)
    t4 = target.reshape(N, C, Mq, 128)

    itemsize = max(output.dtype.itemsize, target.dtype.itemsize)
    bm = _pick_block_rows(Mq, C, itemsize=itemsize)
    acc_rows = 8 if bm % 8 == 0 else bm
    grid = (N, Mq // bm)

    kernel = functools.partial(_dice_kernel, acc_rows=acc_rows)

    inter, denom = pl.pallas_call(
        kernel,
        out_shape=(
            jax.ShapeDtypeStruct((N, C, acc_rows, 128), jnp.float32),
            jax.ShapeDtypeStruct((N, C, acc_rows, 128), jnp.float32),
        ),
        grid_spec=pltpu.PrefetchScalarGridSpec(
            num_scalar_prefetch=0,
            grid=grid,
            in_specs=[
                pl.BlockSpec((None, C, bm, 128), lambda n, j: (n, 0, j, 0)),
                pl.BlockSpec((None, C, bm, 128), lambda n, j: (n, 0, j, 0)),
            ],
            out_specs=(
                pl.BlockSpec((None, C, acc_rows, 128), lambda n, j: (n, 0, 0, 0)),
                pl.BlockSpec((None, C, acc_rows, 128), lambda n, j: (n, 0, 0, 0)),
            ),
        ),
        compiler_params=pltpu.CompilerParams(
            dimension_semantics=("parallel", "arbitrary"),
        ),
    )(x4, t4)

    # Tiny final combine (N*C*acc_rows*128 elements) in plain XLA.
    intersect = jnp.sum(inter, axis=(0, 2, 3))      # (C,)
    denominator = jnp.sum(denom, axis=(0, 2, 3))    # (C,)
    dice = intersect / denominator                  # epsilon unused, as in torch module
    return 1.0 - jnp.mean(dice)


def _dice_loss_ref(output, target):
    """Pure-JAX reference mirroring the PyTorch forward."""
    target = jnp.squeeze(target, axis=1)
    p = jax.nn.softmax(output, axis=1)
    C = output.shape[1]
    pf = jnp.transpose(p, (1, 0, 2, 3)).reshape(C, -1)
    tf = jnp.transpose(target, (1, 0, 2, 3)).reshape(C, -1)
    intersect = jnp.sum(pf * tf, axis=-1)
    denominator = jnp.sum(pf + tf, axis=-1)
    return 1.0 - jnp.mean(intersect / denominator)


if __name__ == "__main__":
    key = jax.random.PRNGKey(0)
    k1, k2 = jax.random.split(key)

    N, C, H, W = 2, 4, 16, 16
    logits = jax.random.normal(k1, (N, C, H, W), dtype=jnp.float32)
    # one-hot-ish soft target with the extra dim=1 the module squeezes away
    target = jax.nn.softmax(
        jax.random.normal(k2, (N, 1, C, H, W), dtype=jnp.float32) * 3.0, axis=2
    )

    loss = dice_loss(logits, target)
    jax.block_until_ready(loss)

    ref = _dice_loss_ref(logits, target)
    assert jnp.allclose(loss, ref, atol=2e-3, rtol=2e-3), (loss, ref)

    print("KERNEL_OK")
</pallas_src>

<mosaic_0001>
module attributes {stable_mosaic.version = 11 : i64} {
  func.func @_dice_kernel(%arg0: i32, %arg1: i32, %arg2: memref<1x4x2x128xf32, #tpu.memory_space<vmem>>, %arg3: memref<1x4x2x128xf32, #tpu.memory_space<vmem>>, %arg4: memref<1x4x2x128xf32, #tpu.memory_space<vmem>>, %arg5: memref<1x4x2x128xf32, #tpu.memory_space<vmem>>) attributes {dimension_semantics = [#tpu.dimension_semantics<parallel>, #tpu.dimension_semantics<arbitrary>], iteration_bounds = array<i64: 2, 1>, scalar_prefetch = 0 : i64, scratch_operands = 0 : i64, tpu.core_type = #tpu.core_type<tc>, window_params = [{transform_indices = @transform_0, window_bounds = array<i64: 1, 4, 2, 128>}, {transform_indices = @transform_1, window_bounds = array<i64: 1, 4, 2, 128>}, {transform_indices = @transform_2, window_bounds = array<i64: 1, 4, 2, 128>}, {transform_indices = @transform_3, window_bounds = array<i64: 1, 4, 2, 128>}]} {
    %c0_i32 = arith.constant 0 : i32
    %0 = arith.cmpi eq, %arg1, %c0_i32 : i32
    %1 = arith.extui %0 : i1 to i32
    %c0_i32_0 = arith.constant 0 : i32
    %2 = arith.cmpi ne, %1, %c0_i32_0 : i32
    scf.if %2 {
      %cst_27 = arith.constant 0.000000e+00 : f32
      %35 = vector.broadcast %cst_27 : f32 to vector<4x2x128xf32>
      %c0_28 = arith.constant 0 : index
      %c0_29 = arith.constant 0 : index
      %c0_30 = arith.constant 0 : index
      %c0_31 = arith.constant 0 : index
      %36 = vector.load %arg4[%c0_28, %c0_29, %c0_30, %c0_31] : memref<1x4x2x128xf32, #tpu.memory_space<vmem>>, vector<1x4x2x128xf32>
      %37 = vector.shape_cast %36 : vector<1x4x2x128xf32> to vector<4x2x128xf32>
      %38 = vector.shape_cast %35 : vector<4x2x128xf32> to vector<1x4x2x128xf32>
      tpu.vector_store %arg4[%c0_28, %c0_29, %c0_30, %c0_31], %38 {strides = array<i32>} : memref<1x4x2x128xf32, #tpu.memory_space<vmem>>, vector<1x4x2x128xf32>,
      %cst_32 = arith.constant 0.000000e+00 : f32
      %39 = vector.broadcast %cst_32 : f32 to vector<4x2x128xf32>
      %c0_33 = arith.constant 0 : index
      %c0_34 = arith.constant 0 : index
      %c0_35 = arith.constant 0 : index
      %c0_36 = arith.constant 0 : index
      %40 = vector.load %arg5[%c0_33, %c0_34, %c0_35, %c0_36] : memref<1x4x2x128xf32, #tpu.memory_space<vmem>>, vector<1x4x2x128xf32>
      %41 = vector.shape_cast %40 : vector<1x4x2x128xf32> to vector<4x2x128xf32>
      %42 = vector.shape_cast %39 : vector<4x2x128xf32> to vector<1x4x2x128xf32>
      tpu.vector_store %arg5[%c0_33, %c0_34, %c0_35, %c0_36], %42 {strides = array<i32>} : memref<1x4x2x128xf32, #tpu.memory_space<vmem>>, vector<1x4x2x128xf32>,
    } else {
    }
    %c0 = arith.constant 0 : index
    %c0_1 = arith.constant 0 : index
    %c0_2 = arith.constant 0 : index
    %c0_3 = arith.constant 0 : index
    %3 = vector.load %arg2[%c0, %c0_1, %c0_2, %c0_3] : memref<1x4x2x128xf32, #tpu.memory_space<vmem>>, vector<1x4x2x128xf32>
    %4 = vector.shape_cast %3 : vector<1x4x2x128xf32> to vector<4x2x128xf32>
    %c0_4 = arith.constant 0 : index
    %c0_5 = arith.constant 0 : index
    %c0_6 = arith.constant 0 : index
    %c0_7 = arith.constant 0 : index
    %5 = vector.load %arg3[%c0_4, %c0_5, %c0_6, %c0_7] : memref<1x4x2x128xf32, #tpu.memory_space<vmem>>, vector<1x4x2x128xf32>
    %6 = vector.shape_cast %5 : vector<1x4x2x128xf32> to vector<4x2x128xf32>
    %cst = arith.constant dense<0xFF800000> : vector<2x128xf32>
    %7 = vector.multi_reduction <maximumf>, %4, %cst [0] : vector<4x2x128xf32> to vector<2x128xf32>
    %8 = vector.shape_cast %7 : vector<2x128xf32> to vector<1x2x128xf32>
    %9 = vector.broadcast %8 : vector<1x2x128xf32> to vector<4x2x128xf32>
    %10 = arith.subf %4, %9 : vector<4x2x128xf32>
    %11 = math.exp %10 : vector<4x2x128xf32>
    %cst_8 = arith.constant dense<0.000000e+00> : vector<2x128xf32>
    %12 = vector.multi_reduction <add>, %11, %cst_8 [0] : vector<4x2x128xf32> to vector<2x128xf32>
    %13 = vector.shape_cast %12 : vector<2x128xf32> to vector<1x2x128xf32>
    %14 = tpu.reciprocal %13 {approx = true} : vector<1x2x128xf32> -> vector<1x2x128xf32>
    %15 = vector.broadcast %14 : vector<1x2x128xf32> to vector<4x2x128xf32>
    %16 = arith.mulf %11, %15 : vector<4x2x128xf32>
    %17 = arith.mulf %16, %6 : vector<4x2x128xf32>
    %18 = vector.shape_cast %17 : vector<4x2x128xf32> to vector<4x1x2x128xf32>
    %cst_9 = arith.constant dense<0.000000e+00> : vector<4x2x128xf32>
    %19 = vector.multi_reduction <add>, %18, %cst_9 [1] : vector<4x1x2x128xf32> to vector<4x2x128xf32>
    %20 = arith.addf %16, %6 : vector<4x2x128xf32>
    %21 = vector.shape_cast %20 : vector<4x2x128xf32> to vector<4x1x2x128xf32>
    %cst_10 = arith.constant dense<0.000000e+00> : vector<4x2x128xf32>
    %22 = vector.multi_reduction <add>, %21, %cst_10 [1] : vector<4x1x2x128xf32> to vector<4x2x128xf32>
    %c0_11 = arith.constant 0 : index
    %c0_12 = arith.constant 0 : index
    %c0_13 = arith.constant 0 : index
    %c0_14 = arith.constant 0 : index
    %23 = vector.load %arg4[%c0_11, %c0_12, %c0_13, %c0_14] : memref<1x4x2x128xf32, #tpu.memory_space<vmem>>, vector<1x4x2x128xf32>
    %24 = vector.shape_cast %23 : vector<1x4x2x128xf32> to vector<4x2x128xf32>
    %25 = arith.addf %24, %19 : vector<4x2x128xf32>
    %c0_15 = arith.constant 0 : index
    %c0_16 = arith.constant 0 : index
    %c0_17 = arith.constant 0 : index
    %c0_18 = arith.constant 0 : index
    %26 = vector.load %arg4[%c0_15, %c0_16, %c0_17, %c0_18] : memref<1x4x2x128xf32, #tpu.memory_space<vmem>>, vector<1x4x2x128xf32>
    %27 = vector.shape_cast %26 : vector<1x4x2x128xf32> to vector<4x2x128xf32>
    %28 = vector.shape_cast %25 : vector<4x2x128xf32> to vector<1x4x2x128xf32>
    tpu.vector_store %arg4[%c0_15, %c0_16, %c0_17, %c0_18], %28 {strides = array<i32>} : memref<1x4x2x128xf32, #tpu.memory_space<vmem>>, vector<1x4x2x128xf32>,
    %c0_19 = arith.constant 0 : index
    %c0_20 = arith.constant 0 : index
    %c0_21 = arith.constant 0 : index
    %c0_22 = arith.constant 0 : index
    %29 = vector.load %arg5[%c0_19, %c0_20, %c0_21, %c0_22] : memref<1x4x2x128xf32, #tpu.memory_space<vmem>>, vector<1x4x2x128xf32>
    %30 = vector.shape_cast %29 : vector<1x4x2x128xf32> to vector<4x2x128xf32>
    %31 = arith.addf %30, %22 : vector<4x2x128xf32>
    %c0_23 = arith.constant 0 : index
    %c0_24 = arith.constant 0 : index
    %c0_25 = arith.constant 0 : index
    %c0_26 = arith.constant 0 : index
    %32 = vector.load %arg5[%c0_23, %c0_24, %c0_25, %c0_26] : memref<1x4x2x128xf32, #tpu.memory_space<vmem>>, vector<1x4x2x128xf32>
    %33 = vector.shape_cast %32 : vector<1x4x2x128xf32> to vector<4x2x128xf32>
    %34 = vector.shape_cast %31 : vector<4x2x128xf32> to vector<1x4x2x128xf32>
    tpu.vector_store %arg5[%c0_23, %c0_24, %c0_25, %c0_26], %34 {strides = array<i32>} : memref<1x4x2x128xf32, #tpu.memory_space<vmem>>, vector<1x4x2x128xf32>,
    return
  }
  func.func @transform_0(%arg0: i32, %arg1: i32) -> (i32, i32, i32, i32) {
    %c0_i32 = arith.constant 0 : i32
    %c0_i32_0 = arith.constant 0 : i32
    %c0_i32_1 = arith.constant 0 : i32
    return %arg0, %c0_i32, %arg1, %c0_i32_0 : i32, i32, i32, i32
  }
  func.func @transform_1(%arg0: i32, %arg1: i32) -> (i32, i32, i32, i32) {
    %c0_i32 = arith.constant 0 : i32
    %c0_i32_0 = arith.constant 0 : i32
    %c0_i32_1 = arith.constant 0 : i32
    return %arg0, %c0_i32, %arg1, %c0_i32_0 : i32, i32, i32, i32
  }
  func.func @transform_2(%arg0: i32, %arg1: i32) -> (i32, i32, i32, i32) {
    %c0_i32 = arith.constant 0 : i32
    %c0_i32_0 = arith.constant 0 : i32
    %c0_i32_1 = arith.constant 0 : i32
    %c0_i32_2 = arith.constant 0 : i32
    return %arg0, %c0_i32, %c0_i32_0, %c0_i32_1 : i32, i32, i32, i32
  }
  func.func @transform_3(%arg0: i32, %arg1: i32) -> (i32, i32, i32, i32) {
    %c0_i32 = arith.constant 0 : i32
    %c0_i32_0 = arith.constant 0 : i32
    %c0_i32_1 = arith.constant 0 : i32
    %c0_i32_2 = arith.constant 0 : i32
    return %arg0, %c0_i32, %c0_i32_0, %c0_i32_1 : i32, i32, i32, i32
  }
}

</mosaic_0001>

<bundles_post_ra>
// kernel: squeeze.1
= control target key start
LH: loop header
LB: loop body
LE: loop exit
PB: predicated region body
PF: predicated region fallthrough
CT: control target
= control target key end

     0   :  { %vm4_vm0 = vcmask 1047556   ;;  %s357_s16 = smov 96   ;;  %s358_s21 = smov 112   ;;  %vm6_vm1 = vcmask 130048   ;;  %vm37_vm2 = vcmask 1048448   ;;  %vm70_vm3 = vcmask 917248   ;;  %s534_s0 = inlined_call_operand.vmem [shape: f32[2,1,4,16,16], index: 0, kind: input, shape index: {}]   ;;  %s535_s1 = inlined_call_operand.vmem [shape: f32[2,4,2,128], index: 1, kind: output, shape index: {}]  }
   0x1   :  { %v319_v0 = vld [vmem:[%s534_s0 + $0x6] ss:$8 sm:$0xf]   ;;  %v315_v2 = vld [vmem:[%s534_s0 + $0x7] ss:$8 sm:$0xf]  }
   0x2   :  { %v320_v1 = vld [vmem:[%s534_s0 + $0x6] ss:$8 sm:$0xf0]   ;;  %v316_v4 = vld [vmem:[%s534_s0 + $0x7] ss:$8 sm:$0xf0]  }
   0x3   :  { %v67_v3 = vsel %vm4_vm0, %v320_v1, %v319_v0  ;;  %v321_v5 = vld [vmem:[%s534_s0 + $0x46] ss:$8 sm:$0xf]   ;;  %v34_v6 = vsel %vm4_vm0, %v316_v4, %v315_v2  ;;  %v317_v8 = vld [vmem:[%s534_s0 + $0x47] ss:$8 sm:$0xf]  }
   0x4   :  { %68 = vrot.lane.b32.xlu1 %v67_v3, %s357_s16  ;;  %v322_v7 = vld [vmem:[%s534_s0 + $0x46] ss:$8 sm:$0xf0]   ;;  %35 = vrot.lane.b32.xlu0 %v34_v6, %s358_s21  ;;  %v318_v10 = vld [vmem:[%s534_s0 + $0x47] ss:$8 sm:$0xf0]  }
   0x5   :  { %v83_v9 = vsel %vm4_vm0, %v322_v7, %v321_v5  ;;  %v50_v11 = vsel %vm4_vm0, %v318_v10, %v317_v8  ;;  %v325_v12 = vld [vmem:[%s534_s0 + $0x45] ss:$8 sm:$0xf]   ;;  %v329_v18 = vld [vmem:[%s534_s0 + $0x44] ss:$8 sm:$0xf]  }
   0x6   :  { %v326_v13 = vld [vmem:[%s534_s0 + $0x45] ss:$8 sm:$0xf0]   ;;  %v330_v19 = vld [vmem:[%s534_s0 + $0x44] ss:$8 sm:$0xf0]  }
   0x7   :  { %v323_v14 = vld [vmem:[%s534_s0 + $0x5] ss:$8 sm:$0xf]   ;;  %v116_v16 = vsel %vm4_vm0, %v326_v13, %v325_v12  ;;  %v327_v20 = vld [vmem:[%s534_s0 + $0x4] ss:$8 sm:$0xf]   ;;  %v149_v22 = vsel %vm4_vm0, %v330_v19, %v329_v18 }
   0x8   :  { %v324_v15 = vld [vmem:[%s534_s0 + $0x5] ss:$8 sm:$0xf0]   ;;  %84 = vrot.lane.b32.xlu1 %v83_v9, %s357_s16  ;;  %51 = vrot.lane.b32.xlu0 %v50_v11, %s358_s21  ;;  %v328_v21 = vld [vmem:[%s534_s0 + $0x4] ss:$8 sm:$0xf0]  }
   0x9   :  { %v100_v17 = vsel %vm4_vm0, %v324_v15, %v323_v14  ;;  %s359_s11 = smov 80   ;;  %v133_v23 = vsel %vm4_vm0, %v328_v21, %v327_v20  ;;  %v333_v24 = vld [vmem:[%s534_s0 + $0x43] ss:$8 sm:$0xf]   ;;  %s360_s20 = smov 64   ;;  %vm103_vm4 = vcmask 786048  }
   0xa   :  { %v334_v25 = vld [vmem:[%s534_s0 + $0x43] ss:$8 sm:$0xf0]   ;;  %v337_v28 = vld [vmem:[%s534_s0 + $0x42] ss:$8 sm:$0xf]  }
   0xb   :  { %v331_v26 = vld [vmem:[%s534_s0 + $0x3] ss:$8 sm:$0xf]   ;;  %v338_v29 = vld [vmem:[%s534_s0 + $0x42] ss:$8 sm:$0xf0]   ;;  %v182_v30 = vsel %vm4_vm0, %v334_v25, %v333_v24 }
   0xc   :  { %117 = vrot.lane.b32.xlu1 %v116_v16, %s359_s11  ;;  %101 = vrot.lane.b32.xlu0 %v100_v17, %s359_s11  ;;  %v332_v27 = vld [vmem:[%s534_s0 + $0x3] ss:$8 sm:$0xf0]   ;;  %v2_v31 = vld [vmem:[%s534_s0] ss:$8 sm:$0xf]   ;;  %v215_v40 = vsel %vm4_vm0, %v338_v29, %v337_v28 }
   0xd   :  { %v3_v32 = vld [vmem:[%s534_s0] ss:$8 sm:$0xf0]   ;;  %v166_v33 = vsel %vm4_vm0, %v332_v27, %v331_v26  ;;  %v335_v37 = vld [vmem:[%s534_s0 + $0x2] ss:$8 sm:$0xf]  }
   0xe   :  { %v5_v34 = vsel %vm4_vm0, %v3_v32, %v2_v31  ;;  %v313_v35 = vld [vmem:[%s534_s0 + $0x40] ss:$8 sm:$0xf]   ;;  %v336_v38 = vld [vmem:[%s534_s0 + $0x2] ss:$8 sm:$0xf0]  }
   0xf   :  { %v314_v36 = vld [vmem:[%s534_s0 + $0x40] ss:$8 sm:$0xf0]   ;;  %7 = vst.msk [vmem:[#allocation0] sm:$0x3] %vm6_vm1, %v5_v34   ;;  %s361_s8 = smov 48   ;;  %v199_v41 = vsel %vm4_vm0, %v336_v38, %v335_v37 }
  0x10   :  { %150 = vrot.lane.b32.xlu1 %v149_v22, %s360_s20  ;;  %134 = vrot.lane.b32.xlu0 %v133_v23, %s360_s20  ;;  %9 = vst.msk [vmem:[#allocation0 + $0x6] sm:$0xc] %vm6_vm1, %v5_v34   ;;  %11 = vst.msk [vmem:[#allocation0 + $0xc] sm:$0x30] %vm6_vm1, %v5_v34   ;;  %v19_v39 = vsel %vm4_vm0, %v314_v36, %v313_v35  ;;  %s363_s17 = smov 16   ;;  %vm136_vm5 = vcmask 654848  }
  0x11   :  { %13 = vst.msk [vmem:[#allocation0 + $0x12] sm:$0xc0] %vm6_vm1, %v5_v34   ;;  %22 = vst.msk [vmem:[#allocation0 + $0x20] sm:$0x3] %vm6_vm1, %v19_v39   ;;  %vm169_vm6 = vcmask 523648   ;;  %vm202_vm7 = vcmask 392448  }
  0x12   :  { %24 = vst.msk [vmem:[#allocation0 + $0x26] sm:$0xc] %vm6_vm1, %v19_v39   ;;  %26 = vst.msk [vmem:[#allocation0 + $0x2c] sm:$0x30] %vm6_vm1, %v19_v39   ;;  %vm235_vm8 = vcmask 261248  }
  0x13   :  { %28 = vst.msk [vmem:[#allocation0 + $0x32] sm:$0xc0] %vm6_vm1, %v19_v39   ;;  %v341_v42 = vld [vmem:[%s534_s0 + $0x41] ss:$8 sm:$0xf]  }
  0x14   :  { %183 = vrot.lane.b32.xlu1 %v182_v30, %s361_s8  ;;  %167 = vrot.lane.b32.xlu0 %v166_v33, %s361_s8  ;;  %v342_v43 = vld [vmem:[%s534_s0 + $0x41] ss:$8 sm:$0xf0]  }
  0x15   :  { %v339_v44 = vld [vmem:[%s534_s0 + $0x1] ss:$8 sm:$0xf]   ;;  %v248_v46 = vsel %vm4_vm0, %v342_v43, %v341_v42 }
  0x16   :  { %v340_v45 = vld [vmem:[%s534_s0 + $0x1] ss:$8 sm:$0xf0]   ;;  %s362_s0 = smov 32  }
  0x17   :  { %v232_v47 = vsel %vm4_vm0, %v340_v45, %v339_v44 }
  0x18   :  { %216 = vrot.lane.b32.xlu1 %v215_v40, %s362_s0  ;;  %200 = vrot.lane.b32.xlu0 %v199_v41, %s362_s0 }
  0x1c   :  { %249 = vrot.lane.b32.xlu1 %v248_v46, %s363_s17  ;;  %233 = vrot.lane.b32.xlu0 %v232_v47, %s363_s17 }
  0x76   :  { %v69_v48 = vpop.permute.xlu1 %68   ;;  %v36_v49 = vpop.permute.xlu0 %35  }
  0x77   :  { %38 = vst.msk [vmem:[#allocation0] sm:$0x3] %vm37_vm2, %v36_v49   ;;  %40 = vst.msk [vmem:[#allocation0 + $0x6] sm:$0xc] %vm37_vm2, %v36_v49  }
  0x78   :  { %42 = vst.msk [vmem:[#allocation0 + $0xc] sm:$0x30] %vm37_vm2, %v36_v49   ;;  %44 = vst.msk [vmem:[#allocation0 + $0x12] sm:$0xc0] %vm37_vm2, %v36_v49  }
  0x79   :  { %71 = vst.msk [vmem:[#allocation0] sm:$0x3] %vm70_vm3, %v69_v48   ;;  %73 = vst.msk [vmem:[#allocation0 + $0x6] sm:$0xc] %vm70_vm3, %v69_v48  }
  0x7a   :  { %75 = vst.msk [vmem:[#allocation0 + $0xc] sm:$0x30] %vm70_vm3, %v69_v48   ;;  %77 = vst.msk [vmem:[#allocation0 + $0x12] sm:$0xc0] %vm70_vm3, %v69_v48   ;;  %v85_v50 = vpop.permute.xlu1 %84   ;;  %v52_v51 = vpop.permute.xlu0 %51  }
  0x7b   :  { %55 = vst.msk [vmem:[#allocation0 + $0x20] sm:$0x3] %vm37_vm2, %v52_v51   ;;  %57 = vst.msk [vmem:[#allocation0 + $0x26] sm:$0xc] %vm37_vm2, %v52_v51  }
  0x7c   :  { %59 = vst.msk [vmem:[#allocation0 + $0x2c] sm:$0x30] %vm37_vm2, %v52_v51   ;;  %61 = vst.msk [vmem:[#allocation0 + $0x32] sm:$0xc0] %vm37_vm2, %v52_v51  }
  0x7d   :  { %88 = vst.msk [vmem:[#allocation0 + $0x20] sm:$0x3] %vm70_vm3, %v85_v50   ;;  %90 = vst.msk [vmem:[#allocation0 + $0x26] sm:$0xc] %vm70_vm3, %v85_v50  }
  0x7e   :  { %92 = vst.msk [vmem:[#allocation0 + $0x2c] sm:$0x30] %vm70_vm3, %v85_v50   ;;  %94 = vst.msk [vmem:[#allocation0 + $0x32] sm:$0xc0] %vm70_vm3, %v85_v50   ;;  %v118_v52 = vpop.permute.xlu1 %117   ;;  %v102_v53 = vpop.permute.xlu0 %101  }
  0x7f   :  { %121 = vst.msk [vmem:[#allocation0 + $0x20] sm:$0x3] %vm103_vm4, %v118_v52   ;;  %123 = vst.msk [vmem:[#allocation0 + $0x26] sm:$0xc] %vm103_vm4, %v118_v52  }
  0x80   :  { %125 = vst.msk [vmem:[#allocation0 + $0x2c] sm:$0x30] %vm103_vm4, %v118_v52   ;;  %127 = vst.msk [vmem:[#allocation0 + $0x32] sm:$0xc0] %vm103_vm4, %v118_v52  }
  0x81   :  { %104 = vst.msk [vmem:[#allocation0] sm:$0x3] %vm103_vm4, %v102_v53   ;;  %106 = vst.msk [vmem:[#allocation0 + $0x6] sm:$0xc] %vm103_vm4, %v102_v53  }
  0x82   :  { %108 = vst.msk [vmem:[#allocation0 + $0xc] sm:$0x30] %vm103_vm4, %v102_v53   ;;  %110 = vst.msk [vmem:[#allocation0 + $0x12] sm:$0xc0] %vm103_vm4, %v102_v53   ;;  %v151_v54 = vpop.permute.xlu1 %150   ;;  %v135_v55 = vpop.permute.xlu0 %134  }
  0x83   :  { %154 = vst.msk [vmem:[#allocation0 + $0x20] sm:$0x3] %vm136_vm5, %v151_v54   ;;  %156 = vst.msk [vmem:[#allocation0 + $0x26] sm:$0xc] %vm136_vm5, %v151_v54  }
  0x84   :  { %158 = vst.msk [vmem:[#allocation0 + $0x2c] sm:$0x30] %vm136_vm5, %v151_v54   ;;  %160 = vst.msk [vmem:[#allocation0 + $0x32] sm:$0xc0] %vm136_vm5, %v151_v54  }
  0x85   :  { %137 = vst.msk [vmem:[#allocation0] sm:$0x3] %vm136_vm5, %v135_v55   ;;  %139 = vst.msk [vmem:[#allocation0 + $0x6] sm:$0xc] %vm136_vm5, %v135_v55  }
  0x86   :  { %141 = vst.msk [vmem:[#allocation0 + $0xc] sm:$0x30] %vm136_vm5, %v135_v55   ;;  %143 = vst.msk [vmem:[#allocation0 + $0x12] sm:$0xc0] %vm136_vm5, %v135_v55   ;;  %v184_v56 = vpop.permute.xlu1 %183   ;;  %v168_v57 = vpop.permute.xlu0 %167  }
  0x87   :  { %187 = vst.msk [vmem:[#allocation0 + $0x20] sm:$0x3] %vm169_vm6, %v184_v56   ;;  %189 = vst.msk [vmem:[#allocation0 + $0x26] sm:$0xc] %vm169_vm6, %v184_v56  }
  0x88   :  { %191 = vst.msk [vmem:[#allocation0 + $0x2c] sm:$0x30] %vm169_vm6, %v184_v56   ;;  %193 = vst.msk [vmem:[#allocation0 + $0x32] sm:$0xc0] %vm169_vm6, %v184_v56  }
  0x89   :  { %170 = vst.msk [vmem:[#allocation0] sm:$0x3] %vm169_vm6, %v168_v57   ;;  %172 = vst.msk [vmem:[#allocation0 + $0x6] sm:$0xc] %vm169_vm6, %v168_v57  }
  0x8a   :  { %174 = vst.msk [vmem:[#allocation0 + $0xc] sm:$0x30] %vm169_vm6, %v168_v57   ;;  %176 = vst.msk [vmem:[#allocation0 + $0x12] sm:$0xc0] %vm169_vm6, %v168_v57   ;;  %v217_v58 = vpop.permute.xlu1 %216   ;;  %v201_v59 = vpop.permute.xlu0 %200  }
  0x8b   :  { %220 = vst.msk [vmem:[#allocation0 + $0x20] sm:$0x3] %vm202_vm7, %v217_v58   ;;  %222 = vst.msk [vmem:[#allocation0 + $0x26] sm:$0xc] %vm202_vm7, %v217_v58  }
  0x8c   :  { %224 = vst.msk [vmem:[#allocation0 + $0x2c] sm:$0x30] %vm202_vm7, %v217_v58   ;;  %226 = vst.msk [vmem:[#allocation0 + $0x32] sm:$0xc0] %vm202_vm7, %v217_v58  }
  0x8d   :  { %203 = vst.msk [vmem:[#allocation0] sm:$0x3] %vm202_vm7, %v201_v59   ;;  %205 = vst.msk [vmem:[#allocation0 + $0x6] sm:$0xc] %vm202_vm7, %v201_v59  }
  0x8e   :  { %207 = vst.msk [vmem:[#allocation0 + $0xc] sm:$0x30] %vm202_vm7, %v201_v59   ;;  %209 = vst.msk [vmem:[#allocation0 + $0x12] sm:$0xc0] %vm202_vm7, %v201_v59   ;;  %v250_v60 = vpop.permute.xlu1 %249   ;;  %v234_v61 = vpop.permute.xlu0 %233  }
  0x8f   :  { %253 = vst.msk [vmem:[#allocation0 + $0x20] sm:$0x3] %vm235_vm8, %v250_v60   ;;  %255 = vst.msk [vmem:[#allocation0 + $0x26] sm:$0xc] %vm235_vm8, %v250_v60  }
  0x90   :  { %257 = vst.msk [vmem:[#allocation0 + $0x2c] sm:$0x30] %vm235_vm8, %v250_v60   ;;  %259 = vst.msk [vmem:[#allocation0 + $0x32] sm:$0xc0] %vm235_vm8, %v250_v60  }
  0x91   :  { %236 = vst.msk [vmem:[#allocation0] sm:$0x3] %vm235_vm8, %v234_v61   ;;  %238 = vst.msk [vmem:[#allocation0 + $0x6] sm:$0xc] %vm235_vm8, %v234_v61  }
  0x92   :  { %240 = vst.msk [vmem:[#allocation0 + $0xc] sm:$0x30] %vm235_vm8, %v234_v61   ;;  %242 = vst.msk [vmem:[#allocation0 + $0x12] sm:$0xc0] %vm235_vm8, %v234_v61  }
  0x96   :  { %v284_v62 = vld [vmem:[#allocation0 + $0x20] sm:$0x3]  ;;  %v290_v63 = vld [vmem:[#allocation0 + $0x28] sm:$0x3] }
  0x97   :  { %v296_v0 = vld [vmem:[#allocation0 + $0x30] sm:$0x3]  ;;  %346 = vst [vmem:[%s535_s1 + $0x8] sm:$0x3] %v284_v62  ;;  %347 = vst [vmem:[%s535_s1 + $0xa] sm:$0x3] %v290_v63 }
  0x98   :  { %348 = vst [vmem:[%s535_s1 + $0xc] sm:$0x3] %v296_v0  ;;  %v302_v1 = vld [vmem:[#allocation0 + $0x38] sm:$0x3]  ;;  %v263_v2 = vld [vmem:[#allocation0] sm:$0x3] }
  0x99   :  { %v267_v3 = vld [vmem:[#allocation0 + $0x8] sm:$0x3]  ;;  %349 = vst [vmem:[%s535_s1 + $0xe] sm:$0x3] %v302_v1  ;;  %265 = vst [vmem:[%s535_s1] sm:$0x3] %v263_v2 }
  0x9a   :  { %343 = vst [vmem:[%s535_s1 + $0x2] sm:$0x3] %v267_v3  ;;  %v272_v4 = vld [vmem:[#allocation0 + $0x10] sm:$0x3]  ;;  %v278_v5 = vld [vmem:[#allocation0 + $0x18] sm:$0x3] }
  0x9b   :  { %344 = vst [vmem:[%s535_s1 + $0x4] sm:$0x3] %v272_v4  ;;  %345 = vst [vmem:[%s535_s1 + $0x6] sm:$0x3] %v278_v5 }

// kernel: dice_loss.1
= control target key start
LH: loop header
LB: loop body
LE: loop exit
PB: predicated region body
PF: predicated region fallthrough
CT: control target
= control target key end

     0   :  { %s549_s12 = smov 0   ;;  %s551_s13 = smov 0   ;;  %s630_s0 = inlined_call_operand.vmem [shape: f32[2,4,2,128], index: 0, kind: input, shape index: {}]   ;;  %s631_s1 = inlined_call_operand.vmem [shape: f32[2,4,2,128], index: 1, kind: input, shape index: {}]   ;;  %s632_s2 = inlined_call_operand.vmem [shape: f32[2,4,2,128], index: 2, kind: output, shape index: {0}]   ;;  %s633_s3 = inlined_call_operand.vmem [shape: f32[2,4,2,128], index: 3, kind: output, shape index: {1}]  }
   0x1   :  { %s553_s14 = smov 0  }
   0x2 LB: > { %s26_s15 = sadd.s32 1, %s522_s13  ;;  %p454_p0 = scmp.ge.s32.totalorder %s526_s14, 1  ;;  %s526_s14 = sphi %s553_s14, %s14_s14   ;;  %s522_s13 = sphi %s551_s13, %s635_s13   ;;  %s518_s12 = sphi %s549_s12, %s634_s12  }
   0x3   : > { %p28_p1 = scmp.ge.s32.totalorder %s26_s15, 2  ;;  %p172_p2 = scmp.lt.s32.totalorder %s526_s14, 3 }
   0x5   : > { %s637_s15 = smov (%p28_p1, %s26_s15), 0  ;;  %p173_p3 = pnand %p454_p0, %p172_p2 }
   0x6   : > { %p212_p4 = scmp.lt.s32.totalorder (!%p173_p3), %s518_s12, 1  ;;  %vm258_vm0 = vcmask (!%p173_p3), 1041408   ;;  %v528_v0 = vmov (!%p173_p3), 0.0  }
   0x7   : > { %176 = sbr.rel (%p173_p3) target bundleno = 71 (0x47), region = 28 }
   0xe   : > { %s639_s12 = smov (!%p212_p4, %s518_s12), 1 }
   0xf   : > { %s567_s16 = sshll.u32 %s639_s12, 3 }
  0x10   : > { %s573_s19 = scalar_lea.vmem %s632_s2, %s567_s16  ;;  %s579_s22 = scalar_lea.vmem %s633_s3, %s567_s16 }
  0x11   : > { %242 = vst [vmem:[%s573_s19] sm:$0x3] %v528_v0  ;;  %243 = vst [vmem:[%s573_s19 + $0x2] sm:$0x3] %v528_v0  ;;  %s219_s25 = scalar_lea.vmem %s630_s0, %s567_s16  ;;  %s227_s28 = scalar_lea.vmem %s631_s1, %s567_s16 }
  0x12   : > { %244 = vst [vmem:[%s573_s19 + $0x4] sm:$0x3] %v528_v0  ;;  %245 = vst [vmem:[%s573_s19 + $0x6] sm:$0x3] %v528_v0  ;;  %v250_v1 = vld [vmem:[%s219_s25] sm:$0x3] }
  0x13   : > { %246 = vst [vmem:[%s579_s22] sm:$0x3] %v528_v0  ;;  %247 = vst [vmem:[%s579_s22 + $0x2] sm:$0x3] %v528_v0  ;;  %v251_v2 = vld [vmem:[%s219_s25 + $0x2] sm:$0x3]  ;;  %v259_v5 = vsel %vm258_vm0, %v250_v1, -inf }
  0x14   : > { %248 = vst [vmem:[%s579_s22 + $0x4] sm:$0x3] %v528_v0  ;;  %249 = vst [vmem:[%s579_s22 + $0x6] sm:$0x3] %v528_v0  ;;  %v252_v3 = vld [vmem:[%s219_s25 + $0x4] sm:$0x3] }
  0x15   : > { %v253_v4 = vld [vmem:[%s219_s25 + $0x6] sm:$0x3]  ;;  %v260_v6 = vsel %vm258_vm0, %v251_v2, -inf  ;;  %v261_v7 = vsel %vm258_vm0, %v252_v3, -inf  ;;  %v254_v31 = vld [vmem:[%s227_s28] sm:$0x3] }
  0x16   : > { %v262_v8 = vsel %vm258_vm0, %v253_v4, -inf  ;;  %v263_v9 = vmax.f32 %v259_v5, %v260_v6  ;;  %v255_v33 = vld [vmem:[%s227_s28 + $0x2] sm:$0x3]  ;;  %v256_v34 = vld [vmem:[%s227_s28 + $0x4] sm:$0x3] }
  0x17   : > { %v264_v10 = vmax.f32 %v261_v7, %v262_v8  ;;  %v257_v35 = vld [vmem:[%s227_s28 + $0x6] sm:$0x3] }
  0x18   : > { %v306_v37 = vld [vmem:[%s573_s19] sm:$0x3]  ;;  %v307_v39 = vld [vmem:[%s573_s19 + $0x2] sm:$0x3] }
  0x19   : > { %v265_v11 = vmax.f32 %v263_v9, %v264_v10  ;;  %v308_v42 = vld [vmem:[%s573_s19 + $0x4] sm:$0x3]  ;;  %v309_v43 = vld [vmem:[%s573_s19 + $0x6] sm:$0x3] }
  0x1a   : > { %v318_v44 = vld [vmem:[%s579_s22] sm:$0x3]  ;;  %v319_v49 = vld [vmem:[%s579_s22 + $0x2] sm:$0x3] }
  0x1b   : > { %v266_v12 = vsub.f32 %v250_v1, %v265_v11  ;;  %v267_v13 = vsub.f32 %v251_v2, %v265_v11  ;;  %v268_v14 = vsub.f32 %v252_v3, %v265_v11  ;;  %v269_v15 = vsub.f32 %v253_v4, %v265_v11  ;;  %v320_v50 = vld [vmem:[%s579_s22 + $0x4] sm:$0x3]  ;;  %v321_v51 = vld [vmem:[%s579_s22 + $0x6] sm:$0x3] }
  0x1d   : > { %v270_v16 = vmul.f32 1.442695, %v266_v12  ;;  %v272_v17 = vmul.f32 1.442695, %v267_v13  ;;  %v274_v18 = vmul.f32 1.442695, %v268_v14 }
  0x1e   : > { %v276_v19 = vmul.f32 1.442695, %v269_v15 }
  0x1f   : > { %494 = vpow2.f32 %v270_v16 }
  0x20   : > { %496 = vpow2.f32 %v272_v17 }
  0x21   : > { %498 = vpow2.f32 %v274_v18 }
  0x22   : > { %500 = vpow2.f32 %v276_v19 }
  0x29   : > { %v495_v20 = vpop.eup %494 }
  0x2a   : > { %v497_v21 = vpop.eup %496  ;;  %v278_v22 = vsel %vm258_vm0, %v495_v20, 0.0 }
  0x2b   : > { %v499_v23 = vpop.eup %498  ;;  %v279_v24 = vsel %vm258_vm0, %v497_v21, 0.0 }
  0x2c   : > { %v501_v25 = vpop.eup %500  ;;  %v280_v26 = vadd.f32 %v279_v24, %v278_v22  ;;  %v281_v27 = vsel %vm258_vm0, %v499_v23, 0.0 }
  0x2d   : > { %v283_v28 = vsel %vm258_vm0, %v501_v25, 0.0 }
  0x2e   : > { %v282_v29 = vadd.f32 %v281_v27, %v280_v26 }
  0x30   : > { %v284_v30 = vadd.f32 %v283_v28, %v282_v29 }
  0x32   : > { %502 = vrcp.f32 %v284_v30 }
  0x3c   : > { %v503_v32 = vpop.eup %502 }
  0x3d   : > { %v286_v36 = vmul.f32 %v503_v32, %v495_v20  ;;  %v287_v38 = vmul.f32 %v503_v32, %v497_v21  ;;  %v288_v40 = vmul.f32 %v503_v32, %v499_v23  ;;  %v289_v41 = vmul.f32 %v503_v32, %v501_v25 }
  0x3f   : > { %v290_v45 = vmul.f32 %v286_v36, %v254_v31  ;;  %v291_v46 = vmul.f32 %v287_v38, %v255_v33  ;;  %v292_v47 = vmul.f32 %v288_v40, %v256_v34  ;;  %v293_v48 = vmul.f32 %v289_v41, %v257_v35 }
  0x40   : > { %v298_v52 = vadd.f32 %v286_v36, %v254_v31  ;;  %v299_v53 = vadd.f32 %v287_v38, %v255_v33  ;;  %v300_v54 = vadd.f32 %v288_v40, %v256_v34  ;;  %v301_v55 = vadd.f32 %v289_v41, %v257_v35 }
  0x41   : > { %v310_v56 = vadd.f32 %v306_v37, %v290_v45  ;;  %v311_v57 = vadd.f32 %v307_v39, %v291_v46  ;;  %v312_v58 = vadd.f32 %v308_v42, %v292_v47  ;;  %v313_v59 = vadd.f32 %v309_v43, %v293_v48 }
  0x42   : > { %v322_v60 = vadd.f32 %v318_v44, %v298_v52  ;;  %v323_v61 = vadd.f32 %v319_v49, %v299_v53  ;;  %v324_v62 = vadd.f32 %v320_v50, %v300_v54  ;;  %v325_v63 = vadd.f32 %v321_v51, %v301_v55 }
  0x43   : > { %314 = vst [vmem:[%s573_s19] sm:$0x3] %v310_v56  ;;  %315 = vst [vmem:[%s573_s19 + $0x2] sm:$0x3] %v311_v57 }
  0x44   : > { %316 = vst [vmem:[%s573_s19 + $0x4] sm:$0x3] %v312_v58  ;;  %317 = vst [vmem:[%s573_s19 + $0x6] sm:$0x3] %v313_v59 }
  0x45   : > { %326 = vst [vmem:[%s579_s22] sm:$0x3] %v322_v60  ;;  %327 = vst [vmem:[%s579_s22 + $0x2] sm:$0x3] %v323_v61 }
  0x46   : > { %328 = vst [vmem:[%s579_s22 + $0x4] sm:$0x3] %v324_v62  ;;  %329 = vst [vmem:[%s579_s22 + $0x6] sm:$0x3] %v325_v63 }
  0x47 PF: > { %s14_s14 = sadd.s32 1, %s526_s14   ;;  %s634_s12 = smov %s522_s13 }
  0x48   : > { %p11_p5 = scmp.ge.s32.totalorder %s14_s14, 4   ;;  %s635_s13 = smov %s637_s15 }
  0x4a   :  { %13 = sbr.rel (!%p11_p5) target bundleno = 2 (0x2), region = 77 }

</bundles_post_ra>
